<compile_context>
chip_gen: v7x
topology: tpu7x:2x2x1
jax: 0.10.0
libtpu: 0.0.40
codegen_flags: <defaults>
</compile_context>

<pallas_src>
import jax
import jax.numpy as jnp
from jax.experimental import pallas as pl
from jax.experimental.pallas import tpu as pltpu


def rnn_kernel(x_ref, wih0_ref, whh0_ref, b0_ref, w1_ref, b1_ref, out_ref):
    """2-layer tanh RNN over the full sequence.

    x_ref:    (T*B, Dp)  time-major flattened input (zero-padded feature dim)
    wih0_ref: (Dp, H)    layer-0 input weights (transposed, padded)
    whh0_ref: (H,  H)    layer-0 hidden weights (transposed)
    b0_ref:   (1,  H)    layer-0 combined bias (b_ih + b_hh)
    w1_ref:   (2H, H)    layer-1 fused weights [Wih1^T ; Whh1^T]
    b1_ref:   (1,  H)    layer-1 combined bias
    out_ref:  (B,  H)    hidden state of top layer at last time step
    """
    TB, _ = x_ref.shape
    B, H = out_ref.shape
    T = TB // B

    # Hoist all weight/bias reads (and the bias broadcast) out of the loop.
    whh0 = whh0_ref[...]                                  # (H, H)
    w1 = w1_ref[...]                                      # (2H, H)
    b1 = jnp.broadcast_to(b1_ref[...], (B, H))            # (B, H)

    # Layer-0 input GEMM for all time steps at once (b0 folded in).
    # Single MXU op, completely off the recurrent dependency chain.
    pre_x = (jnp.dot(x_ref[...], wih0_ref[...],
                     preferred_element_type=jnp.float32)
             + b0_ref[...])                               # (T*B, H)

    h0 = jnp.zeros((B, H), jnp.float32)
    h1 = jnp.zeros((B, H), jnp.float32)

    # Fully unrolled recurrence: states live in vregs, no VMEM round-trips.
    for t in range(T):
        pre0 = pre_x[t * B:(t + 1) * B, :] + jnp.dot(
            h0, whh0, preferred_element_type=jnp.float32)
        h0 = jnp.tanh(pre0)                               # (B, H)

        h01 = jnp.concatenate([h0, h1], axis=-1)          # (B, 2H)
        pre1 = jnp.dot(h01, w1, preferred_element_type=jnp.float32) + b1
        h1 = jnp.tanh(pre1)                               # (B, H)

    out_ref[...] = h1.astype(out_ref.dtype)


def rnn_forward(sensor_data, params, *, d_pad=8):
    """Pallas equivalent of RNN.forward_sensor (use_all_outputs=False)."""
    x = sensor_data.astype(jnp.float32)            # (B, T, D_in) batch-first
    B, T, D_in = x.shape
    H = params["whh0"].shape[0]

    # Glue: time-major, flatten (T,B) -> rows, zero-pad feature dim to Dp.
    x_tm = jnp.transpose(x, (1, 0, 2)).reshape(T * B, D_in)      # (T*B, D_in)
    x_tm = jnp.pad(x_tm, ((0, 0), (0, d_pad - D_in)))            # (T*B, Dp)

    wih0_t = jnp.pad(params["wih0"].T, ((0, d_pad - D_in), (0, 0)))  # (Dp, H)
    whh0_t = params["whh0"].T                                        # (H, H)
    b0 = (params["bih0"] + params["bhh0"]).reshape(1, H)             # (1, H)
    # Fuse layer-1 weights along K: [h0 | h1] @ [Wih1^T ; Whh1^T].
    w1_fused = jnp.concatenate([params["wih1"].T, params["whh1"].T],
                               axis=0)                               # (2H, H)
    b1 = (params["bih1"] + params["bhh1"]).reshape(1, H)             # (1, H)

    vmem_spec = pl.BlockSpec(memory_space=pltpu.MemorySpace.VMEM)
    out = pl.pallas_call(
        rnn_kernel,
        out_shape=jax.ShapeDtypeStruct((B, H), jnp.float32),
        in_specs=[vmem_spec] * 6,
        out_specs=vmem_spec,
    )(x_tm, wih0_t, whh0_t, b0, w1_fused, b1)
    return out


def rnn_reference(sensor_data, params):
    """Pure-JAX reference matching torch.nn.RNN semantics."""
    x = sensor_data.astype(jnp.float32)
    B, T, _ = x.shape
    H = params["whh0"].shape[0]
    h0 = jnp.zeros((B, H), jnp.float32)
    h1 = jnp.zeros((B, H), jnp.float32)
    for t in range(T):
        xt = x[:, t, :]
        h0 = jnp.tanh(xt @ params["wih0"].T + params["bih0"]
                      + h0 @ params["whh0"].T + params["bhh0"])
        h1 = jnp.tanh(h0 @ params["wih1"].T + params["bih1"]
                      + h1 @ params["whh1"].T + params["bhh1"])
    return h1


def init_params(key, in_feat_dim=1, hidden=32):
    """Deterministic init mimicking torch.nn.RNN's U(-1/sqrt(H), 1/sqrt(H))."""
    k = 1.0 / jnp.sqrt(hidden)
    names_shapes = [
        ("wih0", (hidden, in_feat_dim)),
        ("whh0", (hidden, hidden)),
        ("bih0", (hidden,)),
        ("bhh0", (hidden,)),
        ("wih1", (hidden, hidden)),
        ("whh1", (hidden, hidden)),
        ("bih1", (hidden,)),
        ("bhh1", (hidden,)),
    ]
    params = {}
    for name, shape in names_shapes:
        key, sub = jax.random.split(key)
        params[name] = jax.random.uniform(
            sub, shape, minval=-k, maxval=k, dtype=jnp.float32)
    return params


if __name__ == "__main__":
    key = jax.random.PRNGKey(0)
    k_param, k_data = jax.random.split(key)

    B, T, D_IN, H = 2, 8, 1, 32
    params = init_params(k_param, in_feat_dim=D_IN, hidden=H)

    # sensor_data: (batch, seq, in_feat_dim) — batch_first like the PyTorch module.
    sensor_data = jax.random.normal(k_data, (B, T, D_IN), dtype=jnp.float32)
    ts_data = None  # unused for data_type='sensor'

    out = rnn_forward(sensor_data, params)
    out = jax.block_until_ready(out)

    ref = jax.block_until_ready(rnn_reference(sensor_data, params))
    assert out.shape == (B, H)
    assert jnp.allclose(out, ref, atol=2e-3, rtol=2e-3), "mismatch vs reference"

    print("KERNEL_OK")
</pallas_src>

<mosaic_0001>
module attributes {stable_mosaic.version = 11 : i64} {
  func.func @rnn_kernel(%arg0: memref<16x8xf32, #tpu.memory_space<vmem>>, %arg1: memref<8x32xf32, #tpu.memory_space<vmem>>, %arg2: memref<32x32xf32, #tpu.memory_space<vmem>>, %arg3: memref<1x32xf32, #tpu.memory_space<vmem>>, %arg4: memref<64x32xf32, #tpu.memory_space<vmem>>, %arg5: memref<1x32xf32, #tpu.memory_space<vmem>>, %arg6: memref<2x32xf32, #tpu.memory_space<vmem>>) attributes {dimension_semantics = [], scalar_prefetch = 0 : i64, scratch_operands = 0 : i64, tpu.core_type = #tpu.core_type<tc>} {
    %c0 = arith.constant 0 : index
    %c0_0 = arith.constant 0 : index
    %0 = vector.load %arg2[%c0, %c0_0] : memref<32x32xf32, #tpu.memory_space<vmem>>, vector<32x32xf32>
    %c0_1 = arith.constant 0 : index
    %c0_2 = arith.constant 0 : index
    %1 = vector.load %arg4[%c0_1, %c0_2] : memref<64x32xf32, #tpu.memory_space<vmem>>, vector<64x32xf32>
    %c0_3 = arith.constant 0 : index
    %c0_4 = arith.constant 0 : index
    %2 = vector.load %arg5[%c0_3, %c0_4] : memref<1x32xf32, #tpu.memory_space<vmem>>, vector<1x32xf32>
    %3 = vector.shape_cast %2 : vector<1x32xf32> to vector<1x32xf32>
    %4 = vector.broadcast %3 : vector<1x32xf32> to vector<2x32xf32>
    %c0_5 = arith.constant 0 : index
    %c0_6 = arith.constant 0 : index
    %5 = vector.load %arg0[%c0_5, %c0_6] : memref<16x8xf32, #tpu.memory_space<vmem>>, vector<16x8xf32>
    %c0_7 = arith.constant 0 : index
    %c0_8 = arith.constant 0 : index
    %6 = vector.load %arg1[%c0_7, %c0_8] : memref<8x32xf32, #tpu.memory_space<vmem>>, vector<8x32xf32>
    %cst = arith.constant dense<0.000000e+00> : vector<16x32xf32>
    %7 = tpu.matmul %5, %6, %cst {dimension_numbers = #tpu.dot_dimension_numbers<[1], [0], [0], [1], [0, 0, 1, 1], [], []>} : vector<16x8xf32>, vector<8x32xf32>, vector<16x32xf32> -> vector<16x32xf32>
    %c0_9 = arith.constant 0 : index
    %c0_10 = arith.constant 0 : index
    %8 = vector.load %arg3[%c0_9, %c0_10] : memref<1x32xf32, #tpu.memory_space<vmem>>, vector<1x32xf32>
    %9 = vector.broadcast %8 : vector<1x32xf32> to vector<16x32xf32>
    %10 = arith.addf %7, %9 : vector<16x32xf32>
    %cst_11 = arith.constant 0.000000e+00 : f32
    %11 = vector.broadcast %cst_11 : f32 to vector<2x32xf32>
    %cst_12 = arith.constant 0.000000e+00 : f32
    %12 = vector.broadcast %cst_12 : f32 to vector<2x32xf32>
    %13 = vector.extract_strided_slice %10 {offsets = [0, 0], sizes = [2, 32], strides = [1, 1]} : vector<16x32xf32> to vector<2x32xf32>
    %cst_13 = arith.constant dense<0.000000e+00> : vector<2x32xf32>
    %14 = tpu.matmul %11, %0, %cst_13 {dimension_numbers = #tpu.dot_dimension_numbers<[1], [0], [0], [1], [0, 0, 1, 1], [], []>} : vector<2x32xf32>, vector<32x32xf32>, vector<2x32xf32> -> vector<2x32xf32>
    %15 = arith.addf %13, %14 : vector<2x32xf32>
    %16 = math.tanh %15 : vector<2x32xf32>
    %17 = tpu.concatenate %16, %12 in 1 : vector<2x32xf32>, vector<2x32xf32> -> vector<2x64xf32>
    %cst_14 = arith.constant dense<0.000000e+00> : vector<2x32xf32>
    %18 = tpu.matmul %17, %1, %cst_14 {dimension_numbers = #tpu.dot_dimension_numbers<[1], [0], [0], [1], [0, 0, 1, 1], [], []>} : vector<2x64xf32>, vector<64x32xf32>, vector<2x32xf32> -> vector<2x32xf32>
    %19 = arith.addf %18, %4 : vector<2x32xf32>
    %20 = math.tanh %19 : vector<2x32xf32>
    %21 = vector.extract_strided_slice %10 {offsets = [2, 0], sizes = [2, 32], strides = [1, 1]} : vector<16x32xf32> to vector<2x32xf32>
    %cst_15 = arith.constant dense<0.000000e+00> : vector<2x32xf32>
    %22 = tpu.matmul %16, %0, %cst_15 {dimension_numbers = #tpu.dot_dimension_numbers<[1], [0], [0], [1], [0, 0, 1, 1], [], []>} : vector<2x32xf32>, vector<32x32xf32>, vector<2x32xf32> -> vector<2x32xf32>
    %23 = arith.addf %21, %22 : vector<2x32xf32>
    %24 = math.tanh %23 : vector<2x32xf32>
    %25 = tpu.concatenate %24, %20 in 1 : vector<2x32xf32>, vector<2x32xf32> -> vector<2x64xf32>
    %cst_16 = arith.constant dense<0.000000e+00> : vector<2x32xf32>
    %26 = tpu.matmul %25, %1, %cst_16 {dimension_numbers = #tpu.dot_dimension_numbers<[1], [0], [0], [1], [0, 0, 1, 1], [], []>} : vector<2x64xf32>, vector<64x32xf32>, vector<2x32xf32> -> vector<2x32xf32>
    %27 = arith.addf %26, %4 : vector<2x32xf32>
    %28 = math.tanh %27 : vector<2x32xf32>
    %29 = vector.extract_strided_slice %10 {offsets = [4, 0], sizes = [2, 32], strides = [1, 1]} : vector<16x32xf32> to vector<2x32xf32>
    %cst_17 = arith.constant dense<0.000000e+00> : vector<2x32xf32>
    %30 = tpu.matmul %24, %0, %cst_17 {dimension_numbers = #tpu.dot_dimension_numbers<[1], [0], [0], [1], [0, 0, 1, 1], [], []>} : vector<2x32xf32>, vector<32x32xf32>, vector<2x32xf32> -> vector<2x32xf32>
    %31 = arith.addf %29, %30 : vector<2x32xf32>
    %32 = math.tanh %31 : vector<2x32xf32>
    %33 = tpu.concatenate %32, %28 in 1 : vector<2x32xf32>, vector<2x32xf32> -> vector<2x64xf32>
    %cst_18 = arith.constant dense<0.000000e+00> : vector<2x32xf32>
    %34 = tpu.matmul %33, %1, %cst_18 {dimension_numbers = #tpu.dot_dimension_numbers<[1], [0], [0], [1], [0, 0, 1, 1], [], []>} : vector<2x64xf32>, vector<64x32xf32>, vector<2x32xf32> -> vector<2x32xf32>
    %35 = arith.addf %34, %4 : vector<2x32xf32>
    %36 = math.tanh %35 : vector<2x32xf32>
    %37 = vector.extract_strided_slice %10 {offsets = [6, 0], sizes = [2, 32], strides = [1, 1]} : vector<16x32xf32> to vector<2x32xf32>
    %cst_19 = arith.constant dense<0.000000e+00> : vector<2x32xf32>
    %38 = tpu.matmul %32, %0, %cst_19 {dimension_numbers = #tpu.dot_dimension_numbers<[1], [0], [0], [1], [0, 0, 1, 1], [], []>} : vector<2x32xf32>, vector<32x32xf32>, vector<2x32xf32> -> vector<2x32xf32>
    %39 = arith.addf %37, %38 : vector<2x32xf32>
    %40 = math.tanh %39 : vector<2x32xf32>
    %41 = tpu.concatenate %40, %36 in 1 : vector<2x32xf32>, vector<2x32xf32> -> vector<2x64xf32>
    %cst_20 = arith.constant dense<0.000000e+00> : vector<2x32xf32>
    %42 = tpu.matmul %41, %1, %cst_20 {dimension_numbers = #tpu.dot_dimension_numbers<[1], [0], [0], [1], [0, 0, 1, 1], [], []>} : vector<2x64xf32>, vector<64x32xf32>, vector<2x32xf32> -> vector<2x32xf32>
    %43 = arith.addf %42, %4 : vector<2x32xf32>
    %44 = math.tanh %43 : vector<2x32xf32>
    %45 = vector.extract_strided_slice %10 {offsets = [8, 0], sizes = [2, 32], strides = [1, 1]} : vector<16x32xf32> to vector<2x32xf32>
    %cst_21 = arith.constant dense<0.000000e+00> : vector<2x32xf32>
    %46 = tpu.matmul %40, %0, %cst_21 {dimension_numbers = #tpu.dot_dimension_numbers<[1], [0], [0], [1], [0, 0, 1, 1], [], []>} : vector<2x32xf32>, vector<32x32xf32>, vector<2x32xf32> -> vector<2x32xf32>
    %47 = arith.addf %45, %46 : vector<2x32xf32>
    %48 = math.tanh %47 : vector<2x32xf32>
    %49 = tpu.concatenate %48, %44 in 1 : vector<2x32xf32>, vector<2x32xf32> -> vector<2x64xf32>
    %cst_22 = arith.constant dense<0.000000e+00> : vector<2x32xf32>
    %50 = tpu.matmul %49, %1, %cst_22 {dimension_numbers = #tpu.dot_dimension_numbers<[1], [0], [0], [1], [0, 0, 1, 1], [], []>} : vector<2x64xf32>, vector<64x32xf32>, vector<2x32xf32> -> vector<2x32xf32>
    %51 = arith.addf %50, %4 : vector<2x32xf32>
    %52 = math.tanh %51 : vector<2x32xf32>
    %53 = vector.extract_strided_slice %10 {offsets = [10, 0], sizes = [2, 32], strides = [1, 1]} : vector<16x32xf32> to vector<2x32xf32>
    %cst_23 = arith.constant dense<0.000000e+00> : vector<2x32xf32>
    %54 = tpu.matmul %48, %0, %cst_23 {dimension_numbers = #tpu.dot_dimension_numbers<[1], [0], [0], [1], [0, 0, 1, 1], [], []>} : vector<2x32xf32>, vector<32x32xf32>, vector<2x32xf32> -> vector<2x32xf32>
    %55 = arith.addf %53, %54 : vector<2x32xf32>
    %56 = math.tanh %55 : vector<2x32xf32>
    %57 = tpu.concatenate %56, %52 in 1 : vector<2x32xf32>, vector<2x32xf32> -> vector<2x64xf32>
    %cst_24 = arith.constant dense<0.000000e+00> : vector<2x32xf32>
    %58 = tpu.matmul %57, %1, %cst_24 {dimension_numbers = #tpu.dot_dimension_numbers<[1], [0], [0], [1], [0, 0, 1, 1], [], []>} : vector<2x64xf32>, vector<64x32xf32>, vector<2x32xf32> -> vector<2x32xf32>
    %59 = arith.addf %58, %4 : vector<2x32xf32>
    %60 = math.tanh %59 : vector<2x32xf32>
    %61 = vector.extract_strided_slice %10 {offsets = [12, 0], sizes = [2, 32], strides = [1, 1]} : vector<16x32xf32> to vector<2x32xf32>
    %cst_25 = arith.constant dense<0.000000e+00> : vector<2x32xf32>
    %62 = tpu.matmul %56, %0, %cst_25 {dimension_numbers = #tpu.dot_dimension_numbers<[1], [0], [0], [1], [0, 0, 1, 1], [], []>} : vector<2x32xf32>, vector<32x32xf32>, vector<2x32xf32> -> vector<2x32xf32>
    %63 = arith.addf %61, %62 : vector<2x32xf32>
    %64 = math.tanh %63 : vector<2x32xf32>
    %65 = tpu.concatenate %64, %60 in 1 : vector<2x32xf32>, vector<2x32xf32> -> vector<2x64xf32>
    %cst_26 = arith.constant dense<0.000000e+00> : vector<2x32xf32>
    %66 = tpu.matmul %65, %1, %cst_26 {dimension_numbers = #tpu.dot_dimension_numbers<[1], [0], [0], [1], [0, 0, 1, 1], [], []>} : vector<2x64xf32>, vector<64x32xf32>, vector<2x32xf32> -> vector<2x32xf32>
    %67 = arith.addf %66, %4 : vector<2x32xf32>
    %68 = math.tanh %67 : vector<2x32xf32>
    %69 = vector.extract_strided_slice %10 {offsets = [14, 0], sizes = [2, 32], strides = [1, 1]} : vector<16x32xf32> to vector<2x32xf32>
    %cst_27 = arith.constant dense<0.000000e+00> : vector<2x32xf32>
    %70 = tpu.matmul %64, %0, %cst_27 {dimension_numbers = #tpu.dot_dimension_numbers<[1], [0], [0], [1], [0, 0, 1, 1], [], []>} : vector<2x32xf32>, vector<32x32xf32>, vector<2x32xf32> -> vector<2x32xf32>
    %71 = arith.addf %69, %70 : vector<2x32xf32>
    %72 = math.tanh %71 : vector<2x32xf32>
    %73 = tpu.concatenate %72, %68 in 1 : vector<2x32xf32>, vector<2x32xf32> -> vector<2x64xf32>
    %cst_28 = arith.constant dense<0.000000e+00> : vector<2x32xf32>
    %74 = tpu.matmul %73, %1, %cst_28 {dimension_numbers = #tpu.dot_dimension_numbers<[1], [0], [0], [1], [0, 0, 1, 1], [], []>} : vector<2x64xf32>, vector<64x32xf32>, vector<2x32xf32> -> vector<2x32xf32>
    %75 = arith.addf %74, %4 : vector<2x32xf32>
    %76 = math.tanh %75 : vector<2x32xf32>
    %c0_29 = arith.constant 0 : index
    %c0_30 = arith.constant 0 : index
    %77 = vector.load %arg6[%c0_29, %c0_30] : memref<2x32xf32, #tpu.memory_space<vmem>>, vector<2x32xf32>
    tpu.vector_store %arg6[%c0_29, %c0_30], %76 {strides = array<i32>} : memref<2x32xf32, #tpu.memory_space<vmem>>, vector<2x32xf32>,
    return
  }
}

</mosaic_0001>

<bundles_post_ra>
// kernel: tpu_custom_call.1
= control target key start
LH: loop header
LB: loop body
LE: loop exit
PB: predicated region body
PF: predicated region fallthrough
CT: control target
= control target key end

     0   :  { %vm53_vm0 = vcmask 64512   ;;  %v2000_v8 = vmov 0.0|0.0   ;;  %s2296_s0 = inlined_call_operand.vmem [shape: f32[16,8], index: 0, kind: input, shape index: {}]   ;;  %s2297_s1 = inlined_call_operand.vmem [shape: f32[8,32], index: 1, kind: input, shape index: {}]   ;;  %s2298_s2 = inlined_call_operand.vmem [shape: f32[32,32], index: 2, kind: input, shape index: {}]   ;;  %s2299_s3 = inlined_call_operand.vmem [shape: f32[1,32], index: 3, kind: input, shape index: {}]   ;;  %s2300_s4 = inlined_call_operand.vmem [shape: f32[64,32], index: 4, kind: input, shape index: {}]   ;;  %s2301_s5 = inlined_call_operand.vmem [shape: f32[1,32], index: 5, kind: input, shape index: {}]   ;;  %s2302_s6 = inlined_call_operand.hbm [shape: f32[2,32], index: 6, kind: output, shape index: {}]  }
   0x1   :  { %v45_v0 = vld [vmem:[%s2297_s1] sm:$0xff]  ;;  %v44_v2 = vld [vmem:[%s2296_s0 + $0x8] sm:$0xff]  ;;  %v26_v5 = vld [vmem:[%s2298_s2 + $0x10] sm:$0xff]  ;;  %1813 = vmatprep.subr.bf16.mxu1 %v2000_v8 }
   0x2   :  { %v43_v1 = vld [vmem:[%s2296_s0] sm:$0xff]  ;;  %1550 = vmatprep.subr.mxu0 %v45_v0  ;;  %v25_v4 = vld [vmem:[%s2298_s2 + $0x8] sm:$0xff]  ;;  %v27_v7 = vld [vmem:[%s2298_s2 + $0x18] sm:$0xff] }
   0x3   :  { %1552 = vmatprep.mubr.msk.f32.mxu0 %vm53_vm0, %v43_v1  ;;  %v24_v3 = vld [vmem:[%s2298_s2] sm:$0xff]  ;;  %1551 = vmatpush3.msra.mxu0 %v45_v0 }
   0x4   :  { %v2058_v6 = vpack.c.bf16 %v25_v4, %v24_v3 }
   0x5   :  { %11 = vsyncpa [#allocation3], 0  ;;  %1553 = vmatmul.mubr.msk.f32.vlgmr.msra.gmra.mrb[0].mxu0 %vm53_vm0, %v44_v2  ;;  %1795 = vmatprep.subr.bf16.mxu0 %v2000_v8  ;;  %v2066_v9 = vpack.c.bf16 %v27_v7, %v26_v5  ;;  %vm2001_vm1 = vmmov 0   ;;  %v2002_v10 = vmov 0.0   ;;  %v28_v11 = vld [vmem:[%s2300_s4] sm:$0xff]  ;;  %v29_v12 = vld [vmem:[%s2300_s4 + $0x8] sm:$0xff] }
   0x6   :  { %1797 = vmatpush3.bf16.msra.mxu0 %v2058_v6  ;;  %1563 = vmatprep.mubr.msk.f32.mxu0 %vm2001_vm1, %v2002_v10  ;;  %v2088_v13 = vpack.c.bf16 %v29_v12, %v28_v11  ;;  %v30_v14 = vld [vmem:[%s2300_s4 + $0x10] sm:$0xff]  ;;  %v31_v15 = vld [vmem:[%s2300_s4 + $0x18] sm:$0xff]  ;;  %v32_v17 = vld [vmem:[%s2300_s4 + $0x20] sm:$0xff]  ;;  %vm135_vm2 = vcmask 261120   ;;  %vm212_vm3 = vcmask 523264   ;;  %s2003_s26 = smov 32  }
   0x7   :  { %1798 = vmatprep.subr.bf16.mxu0 %v2000_v8  ;;  %1815 = vmatpush3.bf16.msra.mxu1 %v2058_v6  ;;  %v2098_v16 = vpack.c.bf16 %v31_v15, %v30_v14  ;;  %v33_v18 = vld [vmem:[%s2300_s4 + $0x28] sm:$0xff]  ;;  %v34_v20 = vld [vmem:[%s2300_s4 + $0x30] sm:$0xff]  ;;  %v35_v21 = vld [vmem:[%s2300_s4 + $0x38] sm:$0xff]  ;;  %vm1400_vm4 = vcmask 254976  }
   0x8   :  { %1816 = vmatprep.subr.bf16.mxu1 %v2000_v8  ;;  %1593 = vmatprep.mubr.msk.f32.mxu1 %vm2001_vm1, %v2002_v10  ;;  %v2107_v19 = vpack.c.bf16 %v33_v18, %v32_v17  ;;  %v2117_v22 = vpack.c.bf16 %v35_v21, %v34_v20  ;;  %v1417_v23 = vld [vmem:[%s2299_s3] ss:$0 sm:$0xff] }
   0x9   :  { %v2152_v33 = vld [vmem:[%s2301_s5] ss:$0 sm:$0xff]  ;;  %s2004_s5 = smov [#allocation2]  }
   0xa   :  { %1800 = vmatpush3.bf16.msra.mxu0 %v2066_v9  ;;  %s1408_s27 = sshll.u32 %s2004_s5, 4  ;;  %s1409_s27 = int_to_ptr.vmem [resolvable:$true] %s1408_s27 }
   0xb   :  { %1801 = vmatprep.subr.bf16.mxu0 %v2000_v8  ;;  %1818 = vmatpush3.bf16.msra.mxu1 %v2066_v9  ;;  %s1976_s28 = scalar_lea.vmem %s1409_s27, 32  ;;  %p1981_p1 = scmp.lt.s32.totalorder %s1409_s27, %s1409_s27 }
   0xc   :  { %1819 = vmatprep.subr.bf16.mxu1 %v2000_v8  ;;  %p1977_p0 = scmp.ne.s32.totalorder %s1409_s27, %s1976_s28  ;;  %p1982_p2 = scmp.lt.s32.totalorder %s1976_s28, %s1976_s28 }
   0xd   :  { %1564 = vmatmul.mubr.f32.vlgmr.msra.gmra.mrb[2].mxu0 %v2002_v10 }
   0xe   :  { %1582 = vmatprep.mubr.msk.f32.mxu0 %vm2001_vm1, %v2002_v10  ;;  %1803 = vmatpush3.bf16.msra.mxu0 %v2088_v13  ;;  %p1983_p3 = por %p1982_p2, %p1981_p1 }
   0xf   :  { %1804 = vmatprep.subr.bf16.mxu0 %v2000_v8 }
  0x10   :  { %p1984_p4 = pnand %p1983_p3, %p1977_p0 }
  0x12   :  { %1806 = vmatpush3.bf16.msra.mxu0 %v2098_v16 }
  0x13   :  { %1807 = vmatprep.subr.bf16.mxu0 %v2000_v8 }
  0x16   :  { %1809 = vmatpush3.bf16.msra.mxu0 %v2107_v19 }
  0x17   :  { %1810 = vmatprep.subr.bf16.mxu0 %v2000_v8 }
  0x1a   :  { %1812 = vmatpush3.bf16.msra.mxu0 %v2117_v22 }
  0x1b   :  { %1831 = vmatprep.subr.bf16.mxu0 %v2000_v8 }
  0xd8   :  { %v1554_v24 = vpop.f32.mrb[0].mxu0 }
  0xd9   :  { %v2125_v25 = vadd.f32 %v1554_v24, %v1417_v23  ;;  %v126_v26 = vpop.f32.mrb[1].mxu0 }
  0xda   :  { %v2127_v27 = vadd.f32 %v1417_v23, %v126_v26 }
  0xe0   :  { %v205_v28 = vpop.f32.mrb[2].mxu0 }
  0xe1   :  { %v209_v29 = vadd.f32 %v205_v28, %v2127_v27  ;;  %v1565_v30 = vpop.f32.mrb[3].mxu0 }
  0xe3   :  { %1944 = vtanh.f32 %v209_v29 }
  0xed   :  { %v1945_v31 = vpop.eup %1944 }
  0xee   :  { %1594 = vmatmul.mubr.msk.f32.vlgmr.msra.gmra.mrb[0].mxu1 %vm135_vm2, %v1945_v31  ;;  %v211_v32 = vsel %vm135_vm2, %v1945_v31, 0.0 }
  0xef   :  { %1583 = vmatmul.mubr.msk.f32.vlgmr.msra.gmra.mrb[4].mxu0 %vm212_vm3, %v211_v32  ;;  %1821 = vmatpush3.bf16.msra.mxu1 %v2088_v13 }
  0xf0   :  { %1833 = vmatpush3.bf16.msra.mxu0 %v2058_v6  ;;  %1623 = vmatprep.mubr.msk.f32.mxu0 %vm2001_vm1, %v2002_v10 }
  0xf1   :  { %1834 = vmatprep.subr.bf16.mxu0 %v2000_v8  ;;  %1822 = vmatprep.subr.bf16.mxu1 %v2000_v8 }
  0xf2   :  { %1612 = vmatprep.mubr.msk.f32.mxu1 %vm2001_vm1, %v2002_v10 }
  0xf3   :  { %1824 = vmatpush3.bf16.msra.mxu1 %v2098_v16 }
  0xf4   :  { %1836 = vmatpush3.bf16.msra.mxu0 %v2066_v9  ;;  %1825 = vmatprep.subr.bf16.mxu1 %v2000_v8 }
  0xf5   :  { %1837 = vmatprep.subr.bf16.mxu0 %v2000_v8 }
  0xf7   :  { %1827 = vmatpush3.bf16.msra.mxu1 %v2107_v19 }
  0xf8   :  { %1828 = vmatprep.subr.bf16.mxu1 %v2000_v8 }
  0xfb   :  { %1830 = vmatpush3.bf16.msra.mxu1 %v2117_v22 }
  0xfc   :  { %1849 = vmatprep.subr.bf16.mxu1 %v2000_v8 }
 0x1c1   :  { %v356_v34 = vpop.f32.mrb[0].mxu1 }
 0x1c2   :  { %v361_v35 = vrot.slane %v356_v34, 6  ;;  %v282_v36 = vpop.f32.mrb[4].mxu0  ;;  %v1595_v37 = vpop.f32.mrb[1].mxu1 }
 0x1c3   :  { %v283_v38 = vadd.f32 %v2152_v33, %v282_v36  ;;  %v1584_v39 = vpop.f32.mrb[5].mxu0 }
 0x1c4   :  { %v363_v40 = vadd.f32 %v361_v35, %v2127_v27 }
 0x1c5   :  { %1946 = vtanh.f32 %v283_v38 }
 0x1c6   :  { %1948 = vtanh.f32 %v363_v40 }
 0x1cf   :  { %v1947_v41 = vpop.eup %1946 }
 0x1d0   :  { %v1949_v42 = vpop.eup %1948  ;;  %v366_v43 = vrot.slane %v1947_v41, 6 }
 0x1d1   :  { %v447_v44 = vrot.slane %v1949_v42, 2 }
 0x1d2   :  { %367 = vrot.lane.b32.xlu0 %v366_v43, %s2003_s26 }
 0x1d3   :  { %1624 = vmatmul.mubr.msk.f32.vlgmr.msra.gmra.mrb[6].mxu0 %vm135_vm2, %v447_v44 }
 0x1d4   :  { %1839 = vmatpush3.bf16.msra.mxu0 %v2088_v13  ;;  %1642 = vmatprep.mubr.msk.f32.mxu0 %vm2001_vm1, %v2002_v10 }
 0x1d5   :  { %1840 = vmatprep.subr.bf16.mxu0 %v2000_v8 }
 0x1d8   :  { %1842 = vmatpush3.bf16.msra.mxu0 %v2098_v16 }
 0x1d9   :  { %1843 = vmatprep.subr.bf16.mxu0 %v2000_v8 }
 0x1dc   :  { %1845 = vmatpush3.bf16.msra.mxu0 %v2107_v19 }
 0x1dd   :  { %1846 = vmatprep.subr.bf16.mxu0 %v2000_v8 }
 0x1e0   :  { %1848 = vmatpush3.bf16.msra.mxu0 %v2117_v22 }
 0x1e1   :  { %1867 = vmatprep.subr.bf16.mxu0 %v2000_v8 }
 0x244   :  { %v368_v45 = vpop.permute.xlu0 %367 }
 0x245   :  { %v370_v46 = vsel %vm135_vm2, %v1949_v42, %v368_v45 }
 0x246   :  { %v372_v47 = vrot.slane %v370_v46, 2 }
 0x248   :  { %1613 = vmatmul.mubr.msk.f32.vlgmr.msra.gmra.mrb[2].mxu1 %vm212_vm3, %v372_v47 }
 0x249   :  { %1851 = vmatpush3.bf16.msra.mxu1 %v2058_v6  ;;  %1653 = vmatprep.mubr.msk.f32.mxu1 %vm2001_vm1, %v2002_v10 }
 0x24a   :  { %1852 = vmatprep.subr.bf16.mxu1 %v2000_v8 }
 0x24d   :  { %1854 = vmatpush3.bf16.msra.mxu1 %v2066_v9 }
 0x24e   :  { %1855 = vmatprep.subr.bf16.mxu1 %v2000_v8 }
 0x2a6   :  { %v516_v48 = vpop.f32.mrb[6].mxu0 }
 0x2a7   :  { %v521_v49 = vrot.slane %v516_v48, 4  ;;  %v1625_v50 = vpop.f32.mrb[7].mxu0 }
 0x2a9   :  { %v523_v51 = vadd.f32 %v521_v49, %v2127_v27 }
 0x2ab   :  { %1950 = vtanh.f32 %v523_v51 }
 0x2b5   :  { %v1951_v52 = vpop.eup %1950 }
 0x2b6   :  { %v607_v53 = vrot.slane %v1951_v52, 4 }
 0x2b8   :  { %1654 = vmatmul.mubr.msk.f32.vlgmr.msra.gmra.mrb[4].mxu1 %vm135_vm2, %v607_v53 }
 0x2b9   :  { %1857 = vmatpush3.bf16.msra.mxu1 %v2088_v13  ;;  %1672 = vmatprep.mubr.msk.f32.mxu1 %vm2001_vm1, %v2002_v10 }
 0x2ba   :  { %1858 = vmatprep.subr.bf16.mxu1 %v2000_v8 }
 0x2bd   :  { %1860 = vmatpush3.bf16.msra.mxu1 %v2098_v16 }
 0x2be   :  { %1861 = vmatprep.subr.bf16.mxu1 %v2000_v8 }
 0x2c1   :  { %1863 = vmatpush3.bf16.msra.mxu1 %v2107_v19 }
 0x2c2   :  { %1864 = vmatprep.subr.bf16.mxu1 %v2000_v8 }
 0x2c5   :  { %1866 = vmatpush3.bf16.msra.mxu1 %v2117_v22 }
 0x2c6   :  { %1885 = vmatprep.subr.bf16.mxu1 %v2000_v8 }
 0x31b   :  { %v441_v54 = vpop.f32.mrb[2].mxu1 }
 0x31c   :  { %v442_v55 = vadd.f32 %v2152_v33, %v441_v54  ;;  %v1614_v56 = vpop.f32.mrb[3].mxu1 }
 0x31e   :  { %1952 = vtanh.f32 %v442_v55 }
 0x328   :  { %v1953_v57 = vpop.eup %1952 }
 0x329   :  { %v526_v58 = vrot.slane %v1953_v57, 4 }
 0x32b   :  { %527 = vrot.lane.b32.xlu0 %v526_v58, %s2003_s26 }
 0x38b   :  { %v676_v59 = vpop.f32.mrb[4].mxu1 }
 0x38c   :  { %v1655_v60 = vpop.f32.mrb[5].mxu1  ;;  %v681_v61 = vrot.slane %v676_v59, 2 }
 0x38e   :  { %v683_v62 = vadd.f32 %v681_v61, %v2127_v27 }
 0x390   :  { %1954 = vtanh.f32 %v683_v62 }
 0x39a   :  { %v1955_v2 = vpop.eup %1954 }
 0x39b   :  { %v767_v3 = vrot.slane %v1955_v2, 6 }
 0x39d   :  { %v528_v63 = vpop.permute.xlu0 %527 }
 0x39e   :  { %v530_v0 = vsel %vm135_vm2, %v1951_v52, %v528_v63 }
 0x39f   :  { %v532_v1 = vrot.slane %v530_v0, 4 }
 0x3a1   :  { %1643 = vmatmul.mubr.msk.f32.vlgmr.msra.gmra.mrb[8].mxu0 %vm212_vm3, %v532_v1 }
 0x3a2   :  { %1869 = vmatpush3.bf16.msra.mxu0 %v2058_v6  ;;  %1683 = vmatprep.mubr.msk.f32.mxu0 %vm2001_vm1, %v2002_v10 }
 0x3a3   :  { %1870 = vmatprep.subr.bf16.mxu0 %v2000_v8 }
 0x3a6   :  { %1872 = vmatpush3.bf16.msra.mxu0 %v2066_v9 }
 0x3a7   :  { %1873 = vmatprep.subr.bf16.mxu0 %v2000_v8 }
 0x3a9   :  { %1684 = vmatmul.mubr.msk.f32.vlgmr.msra.gmra.mrb[10].mxu0 %vm135_vm2, %v767_v3 }
 0x3aa   :  { %1875 = vmatpush3.bf16.msra.mxu0 %v2088_v13  ;;  %1702 = vmatprep.mubr.msk.f32.mxu0 %vm2001_vm1, %v2002_v10 }
 0x3ab   :  { %1876 = vmatprep.subr.bf16.mxu0 %v2000_v8 }
 0x3ae   :  { %1878 = vmatpush3.bf16.msra.mxu0 %v2098_v16 }
 0x3af   :  { %1879 = vmatprep.subr.bf16.mxu0 %v2000_v8 }
 0x3b2   :  { %1881 = vmatpush3.bf16.msra.mxu0 %v2107_v19 }
 0x3b3   :  { %1882 = vmatprep.subr.bf16.mxu0 %v2000_v8 }
 0x3b6   :  { %1884 = vmatpush3.bf16.msra.mxu0 %v2117_v22 }
 0x3b7   :  { %1903 = vmatprep.subr.bf16.mxu0 %v2000_v8 }
 0x474   :  { %v601_v4 = vpop.f32.mrb[8].mxu0 }
 0x475   :  { %v602_v5 = vadd.f32 %v2152_v33, %v601_v4  ;;  %v1644_v7 = vpop.f32.mrb[9].mxu0 }
 0x477   :  { %1956 = vtanh.f32 %v602_v5 }
 0x47c   :  { %v836_v11 = vpop.f32.mrb[10].mxu0 }
 0x47d   :  { %v1685_v12 = vpop.f32.mrb[11].mxu0  ;;  %v840_v17 = vadd.f32 %v836_v11, %v2125_v25 }
 0x47f   :  { %1958 = vtanh.f32 %v840_v17 }
 0x481   :  { %v1957_v14 = vpop.eup %1956 }
 0x482   :  { %v686_v15 = vrot.slane %v1957_v14, 2 }
 0x484   :  { %687 = vrot.lane.b32.xlu1 %v686_v15, %s2003_s26 }
 0x489   :  { %v1959_v23 = vpop.eup %1958 }
 0x4f6   :  { %v688_v18 = vpop.permute.xlu1 %687 }
 0x4f7   :  { %v690_v20 = vsel %vm135_vm2, %v1955_v2, %v688_v18 }
 0x4f8   :  { %v692_v21 = vrot.slane %v690_v20, 6 }
 0x4fa   :  { %1673 = vmatmul.mubr.msk.f32.vlgmr.msra.gmra.mrb[6].mxu1 %vm212_vm3, %v692_v21 }
 0x4fb   :  { %1887 = vmatpush3.bf16.msra.mxu1 %v2058_v6  ;;  %1713 = vmatprep.mubr.msk.f32.mxu1 %vm2001_vm1, %v2002_v10 }
 0x4fc   :  { %1888 = vmatprep.subr.bf16.mxu1 %v2000_v8 }
 0x4ff   :  { %1890 = vmatpush3.bf16.msra.mxu1 %v2066_v9 }
 0x500   :  { %1891 = vmatprep.subr.bf16.mxu1 %v2000_v8 }
 0x502   :  { %1714 = vmatmul.mubr.msk.f32.vlgmr.msra.gmra.mrb[8].mxu1 %vm135_vm2, %v1959_v23 }
 0x503   :  { %1893 = vmatpush3.bf16.msra.mxu1 %v2088_v13  ;;  %1732 = vmatprep.mubr.msk.f32.mxu1 %vm2001_vm1, %v2002_v10 }
 0x504   :  { %1894 = vmatprep.subr.bf16.mxu1 %v2000_v8 }
 0x507   :  { %1896 = vmatpush3.bf16.msra.mxu1 %v2098_v16 }
 0x508   :  { %1897 = vmatprep.subr.bf16.mxu1 %v2000_v8 }
 0x50b   :  { %1899 = vmatpush3.bf16.msra.mxu1 %v2107_v19 }
 0x50c   :  { %1900 = vmatprep.subr.bf16.mxu1 %v2000_v8 }
 0x50f   :  { %1902 = vmatpush3.bf16.msra.mxu1 %v2117_v22 }
 0x510   :  { %1921 = vmatprep.subr.bf16.mxu1 %v2000_v8 }
 0x5cd   :  { %v761_v24 = vpop.f32.mrb[6].mxu1 }
 0x5ce   :  { %v762_v26 = vadd.f32 %v2152_v33, %v761_v24  ;;  %v1674_v27 = vpop.f32.mrb[7].mxu1 }
 0x5d0   :  { %1960 = vtanh.f32 %v762_v26 }
 0x5d5   :  { %v990_v28 = vpop.f32.mrb[8].mxu1 }
 0x5d6   :  { %v1715_v29 = vpop.f32.mrb[9].mxu1  ;;  %v995_v31 = vrot.slane %v990_v28, 6 }
 0x5d8   :  { %v997_v32 = vadd.f32 %v995_v31, %v2125_v25 }
 0x5da   :  { %v1961_v30 = vpop.eup %1960  ;;  %1962 = vtanh.f32 %v997_v32 }
 0x5db   :  { %843 = vrot.lane.b32.xlu1 %v1961_v30, %s2003_s26 }
 0x5e4   :  { %v1963_v36 = vpop.eup %1962 }
 0x5e5   :  { %v1081_v37 = vrot.slane %v1963_v36, 2 }
 0x64d   :  { %v844_v34 = vpop.permute.xlu1 %843 }
 0x64e   :  { %v846_v35 = vsel %vm135_vm2, %v1959_v23, %v844_v34 }
 0x64f   :  { %1703 = vmatmul.mubr.msk.f32.vlgmr.msra.gmra.mrb[12].mxu0 %vm212_vm3, %v846_v35 }
 0x650   :  { %1905 = vmatpush3.bf16.msra.mxu0 %v2058_v6  ;;  %1743 = vmatprep.mubr.msk.f32.mxu0 %vm2001_vm1, %v2002_v10 }
 0x651   :  { %1906 = vmatprep.subr.bf16.mxu0 %v2000_v8 }
 0x654   :  { %1908 = vmatpush3.bf16.msra.mxu0 %v2066_v9 }
 0x655   :  { %1909 = vmatprep.subr.bf16.mxu0 %v2000_v8 }
 0x657   :  { %1744 = vmatmul.mubr.msk.f32.vlgmr.msra.gmra.mrb[14].mxu0 %vm135_vm2, %v1081_v37 }
 0x658   :  { %1911 = vmatpush3.bf16.msra.mxu0 %v2088_v13  ;;  %1762 = vmatprep.mubr.msk.f32.mxu0 %vm2001_vm1, %v2002_v10 }
 0x659   :  { %1912 = vmatprep.subr.bf16.mxu0 %v2000_v8 }
 0x65c   :  { %1914 = vmatpush3.bf16.msra.mxu0 %v2098_v16 }
 0x65d   :  { %1915 = vmatprep.subr.bf16.mxu0 %v2000_v8 }
 0x660   :  { %1917 = vmatpush3.bf16.msra.mxu0 %v2107_v19 }
 0x661   :  { %1918 = vmatprep.subr.bf16.mxu0 %v2000_v8 }
 0x664   :  { %1920 = vmatpush3.bf16.msra.mxu0 %v2117_v22 }
 0x722   :  { %v916_v38 = vpop.f32.mrb[12].mxu0 }
 0x723   :  { %v917_v39 = vadd.f32 %v2152_v33, %v916_v38  ;;  %v1704_v40 = vpop.f32.mrb[13].mxu0 }
 0x725   :  { %1964 = vtanh.f32 %v917_v39 }
 0x72a   :  { %v1150_v41 = vpop.f32.mrb[14].mxu0 }
 0x72b   :  { %v1745_v42 = vpop.f32.mrb[15].mxu0  ;;  %v1155_v45 = vrot.slane %v1150_v41, 4 }
 0x72d   :  { %v1157_v46 = vadd.f32 %v1155_v45, %v2125_v25 }
 0x72f   :  { %v1965_v43 = vpop.eup %1964  ;;  %1966 = vtanh.f32 %v1157_v46 }
 0x730   :  { %v1000_v44 = vrot.slane %v1965_v43, 6 }
 0x732   :  { %1001 = vrot.lane.b32.xlu0 %v1000_v44, %s2003_s26 }
 0x739   :  { %v1967_v50 = vpop.eup %1966 }
 0x73a   :  { %v1241_v51 = vrot.slane %v1967_v50, 4 }
 0x7a4   :  { %v1002_v47 = vpop.permute.xlu0 %1001 }
 0x7a5   :  { %v1004_v48 = vsel %vm135_vm2, %v1963_v36, %v1002_v47 }
 0x7a6   :  { %v1006_v49 = vrot.slane %v1004_v48, 2 }
 0x7a8   :  { %1733 = vmatmul.mubr.msk.f32.vlgmr.msra.gmra.mrb[10].mxu1 %vm212_vm3, %v1006_v49 }
 0x7a9   :  { %1923 = vmatpush3.bf16.msra.mxu1 %v2058_v6  ;;  %1773 = vmatprep.mubr.msk.f32.mxu1 %vm2001_vm1, %v2002_v10 }
 0x7aa   :  { %1924 = vmatprep.subr.bf16.mxu1 %v2000_v8 }
 0x7ad   :  { %1926 = vmatpush3.bf16.msra.mxu1 %v2066_v9 }
 0x7ae   :  { %1927 = vmatprep.subr.bf16.mxu1 %v2000_v8 }
 0x7b0   :  { %1774 = vmatmul.mubr.msk.f32.vlgmr.msra.gmra.mrb[12].mxu1 %vm135_vm2, %v1241_v51 }
 0x7b1   :  { %1929 = vmatpush3.bf16.msra.mxu1 %v2088_v13  ;;  %1792 = vmatprep.mubr.msk.f32.mxu1 %vm2001_vm1, %v2002_v10 }
 0x7b2   :  { %1930 = vmatprep.subr.bf16.mxu1 %v2000_v8 }
 0x7b5   :  { %1932 = vmatpush3.bf16.msra.mxu1 %v2098_v16 }
 0x7b6   :  { %1933 = vmatprep.subr.bf16.mxu1 %v2000_v8 }
 0x7b9   :  { %1935 = vmatpush3.bf16.msra.mxu1 %v2107_v19 }
 0x7ba   :  { %1936 = vmatprep.subr.bf16.mxu1 %v2000_v8 }
 0x7bd   :  { %1938 = vmatpush3.bf16.msra.mxu1 %v2117_v22 }
 0x87b   :  { %v1075_v6 = vpop.f32.mrb[10].mxu1 }
 0x87c   :  { %v1076_v9 = vadd.f32 %v2152_v33, %v1075_v6  ;;  %v1734_v52 = vpop.f32.mrb[11].mxu1 }
 0x87e   :  { %1968 = vtanh.f32 %v1076_v9 }
 0x883   :  { %v1310_v13 = vpop.f32.mrb[12].mxu1 }
 0x884   :  { %v1775_v53 = vpop.f32.mrb[13].mxu1  ;;  %v1315_v59 = vrot.slane %v1310_v13, 2 }
 0x886   :  { %v1317_v60 = vadd.f32 %v1315_v59, %v2125_v25 }
 0x888   :  { %v1969_v10 = vpop.eup %1968 }
 0x889   :  { %v1160_v54 = vrot.slane %v1969_v10, 4 }
 0x88b   :  { %1161 = vrot.lane.b32.xlu1 %v1160_v54, %s2003_s26 }
 0x8fd   :  { %v1162_v16 = vpop.permute.xlu1 %1161 }
 0x8fe   :  { %v1164_v55 = vsel %vm135_vm2, %v1967_v50, %v1162_v16 }
 0x8ff   :  { %v1166_v56 = vrot.slane %v1164_v55, 4 }
 0x901   :  { %1763 = vmatmul.mubr.msk.f32.vlgmr.msra.gmra.mrb[16].mxu0 %vm212_vm3, %v1166_v56 }
 0x9d4   :  { %v1235_v8 = vpop.f32.mrb[16].mxu0 }
 0x9d5   :  { %v1236_v19 = vadd.f32 %v2152_v33, %v1235_v8  ;;  %v1764_v22 = vpop.f32.mrb[17].mxu0 }
 0x9d7   :  { %1970 = vtanh.f32 %v1236_v19 }
 0x9d8   :  { %1972 = vtanh.f32 %v1317_v60 }
 0x9e1   :  { %v1971_v57 = vpop.eup %1970 }
 0x9e2   :  { %v1320_v58 = vrot.slane %v1971_v57, 2  ;;  %v1973_v61 = vpop.eup %1972 }
 0x9e4   :  { %1321 = vrot.lane.b32.xlu0 %v1320_v58, %s2003_s26 }
 0xa56   :  { %v1322_v62 = vpop.permute.xlu0 %1321 }
 0xa57   :  { %v1324_v63 = vsel %vm135_vm2, %v1973_v61, %v1322_v62 }
 0xa58   :  { %v1326_v0 = vrot.slane %v1324_v63, 6 }
 0xa5a   :  { %1793 = vmatmul.mubr.msk.f32.vlgmr.msra.gmra.mrb[14].mxu1 %vm212_vm3, %v1326_v0 }
 0xb2d   :  { %v1395_v1 = vpop.f32.mrb[14].mxu1 }
 0xb2e   :  { %v1396_v2 = vadd.f32 %v2152_v33, %v1395_v1  ;;  %v1794_v3 = vpop.f32.mrb[15].mxu1 }
 0xb30   :  { %1974 = vtanh.f32 %v1396_v2 }
 0xb3a   :  { %v1975_v4 = vpop.eup %1974 }
 0xb3b   :  { %1401 = vst.msk [vmem:[#allocation2] sm:$0x3] %vm1400_vm4, %v1975_v4 }
 0xb3c   :  { %1987 = shalt.err (!%p1984_p4)
}
 0xb3d   :  { %s1988_s1 = scalar_lea.hbm %s2302_s6, 32 }
 0xb3e   :  { %p1989_p5 = scmp.ne.s32.totalorder %s2302_s6, %s1988_s1  ;;  %p1992_p6 = scmp.lt.u32.totalorder %s1988_s1, %s2302_s6 }
 0xb40   :  { %p1994_p7 = pnand %p1992_p6, %p1989_p5 }
 0xb42   :  { %1997 = shalt.err (!%p1994_p7)
}
 0xb43   :  { %1411 = dma.vmem_to_hbm [thread:$0]  %s1409_s27, 32, %s2302_s6, [#allocation3]  }
 0xb44   :  { %1998 = dma.done.wait [#allocation3], 32  }
 0xb45   :  { %1999 = vsyncadd [#allocation3], 4294967264 }
 0xb46   :  { %1415 = vsyncpa [#allocation3], 1 }

</bundles_post_ra>
